<compile_context>
chip_gen: v6e
topology: v6e:2x2x1
jax: 0.10.0
libtpu: 0.0.40
codegen_flags: <defaults>
</compile_context>

<pallas_src>
import functools

import jax
import jax.numpy as jnp
from jax.experimental import pallas as pl
from jax.experimental.pallas import tpu as pltpu


def _round_up(x, m):
    return (x + m - 1) // m * m


def _iac_kernel(x_ref, w1_ref, w2h_ref, b_ref, out_ref, *, hpad, ppad):
    # fc1 + relu.  x tile cast once to bf16; MXU accumulates in f32.
    x = x_ref[...].astype(jnp.bfloat16)
    h1 = jnp.dot(x, w1_ref[...], preferred_element_type=jnp.float32)
    h1 = jnp.maximum(h1 + b_ref[:, 0:hpad], 0.0)

    # fc2 + relu (w2 is the first hpad columns of the packed slab).
    h2 = jnp.dot(h1.astype(jnp.bfloat16), w2h_ref[:, 0:hpad],
                 preferred_element_type=jnp.float32)
    h2 = jnp.maximum(h2 + b_ref[:, hpad:2 * hpad], 0.0)

    # Fused heads: columns [0:n_actions] = policy logits, column n_actions =
    # value, remaining lanes zero-padded to a lane-dense 128-wide output.
    out = jnp.dot(h2.astype(jnp.bfloat16), w2h_ref[:, hpad:hpad + ppad],
                  preferred_element_type=jnp.float32)
    out_ref[...] = (out + b_ref[:, 2 * hpad:2 * hpad + ppad]).astype(out_ref.dtype)


def pack_params(params, *, weight_dtype=jnp.bfloat16):
    """One-time host-side packing of the 8 small tensors into 3 lane-padded slabs."""
    w1, b1 = params["w1"], params["b1"]
    w2, b2 = params["w2"], params["b2"]
    wp, bp = params["wp"], params["bp"]
    wv, bv = params["wv"], params["bv"]

    in_f, n_hidden = w1.shape
    n_actions = wp.shape[1]
    hpad = _round_up(n_hidden, 128)
    ppad = _round_up(n_actions + 1, 128)

    # fc1 weight, output dim padded to 128 lanes (contraction dim stays = in_f).
    w1p = jnp.zeros((in_f, hpad), jnp.float32).at[:, :n_hidden].set(w1)

    # fc2 weight and fused head weight, packed side by side: (hpad, hpad + ppad).
    w2p = jnp.zeros((hpad, hpad), jnp.float32).at[:n_hidden, :n_hidden].set(w2)
    heads = jnp.concatenate([wp, wv], axis=1)                 # (n_hidden, n_actions+1)
    headsp = (jnp.zeros((hpad, ppad), jnp.float32)
              .at[:n_hidden, :n_actions + 1].set(heads))
    w2h = jnp.concatenate([w2p, headsp], axis=1)

    # All biases in one (1, 2*hpad + ppad) f32 row: [b1 | b2 | bp,bv].
    bheads = jnp.concatenate([bp, bv], axis=1)                # (1, n_actions+1)
    bias = jnp.zeros((1, 2 * hpad + ppad), jnp.float32)
    bias = bias.at[:, :n_hidden].set(b1)
    bias = bias.at[:, hpad:hpad + n_hidden].set(b2)
    bias = bias.at[:, 2 * hpad:2 * hpad + n_actions + 1].set(bheads)

    return dict(w1p=w1p.astype(weight_dtype), w2h=w2h.astype(weight_dtype),
                bias=bias, n_actions=n_actions, hpad=hpad, ppad=ppad,
                in_features=in_f)


def _choose_tile(B, max_tile=1024):
    """Batch tile: big tiles to amortize per-step overhead, even grid >= 2 at
    large B so v7x's two TensorCores both get work, minimal last-tile waste."""
    num_tiles = max(1, pl.cdiv(B, max_tile))
    if num_tiles == 1 and B >= 256:
        num_tiles = 2                       # v7x megacore: split the batch
    elif num_tiles > 1 and num_tiles % 2 == 1:
        num_tiles += 1                      # even grid balances the two TCs
    tile_b = _round_up(pl.cdiv(B, num_tiles), 8)
    return max(8, min(tile_b, _round_up(B, 8)))


def iac_forward(x, packed, *, out_dtype=jnp.float32):
    """x: (B, input_shape) f32. Returns (value (B,1), logits (B,n_actions)).

    Call this inside a jit (or jit a closure over `packed`) so the thin output
    slices fuse with the consumer instead of running as extra HBM passes.
    """
    B, in_f = x.shape
    assert in_f == packed["in_features"]
    hpad, ppad = packed["hpad"], packed["ppad"]
    n_actions = packed["n_actions"]

    tile_b = _choose_tile(B)
    grid = (pl.cdiv(B, tile_b),)            # ragged last block: masked stores

    kernel = functools.partial(_iac_kernel, hpad=hpad, ppad=ppad)

    out = pl.pallas_call(
        kernel,
        out_shape=jax.ShapeDtypeStruct((B, ppad), out_dtype),
        grid=grid,
        in_specs=[
            # x tiles stream over the batch grid (last dim left at in_f: legal
            # full-extent block; lane-padding it would 7x the input HBM bytes).
            pl.BlockSpec((tile_b, in_f), lambda i: (i, 0)),
            # Packed weights/biases: constant block index -> no re-DMA across
            # the grid; resident in VMEM.
            pl.BlockSpec(packed["w1p"].shape, lambda i: (0, 0)),
            pl.BlockSpec(packed["w2h"].shape, lambda i: (0, 0)),
            pl.BlockSpec(packed["bias"].shape, lambda i: (0, 0)),
        ],
        out_specs=pl.BlockSpec((tile_b, ppad), lambda i: (i, 0)),
        compiler_params=pltpu.CompilerParams(
            dimension_semantics=("parallel",),
        ),
    )(x, packed["w1p"], packed["w2h"], packed["bias"])

    logits = out[:, :n_actions]
    value = out[:, n_actions:n_actions + 1]
    return value, logits


def init_params(key, input_shape, n_hidden, n_actions):
    """Deterministic init mimicking nn.Linear's U(-1/sqrt(fan_in), 1/sqrt(fan_in))."""
    def linear(k, fan_in, fan_out):
        kw, kb = jax.random.split(k)
        bound = 1.0 / jnp.sqrt(float(fan_in))
        w = jax.random.uniform(kw, (fan_in, fan_out), jnp.float32, -bound, bound)
        b = jax.random.uniform(kb, (1, fan_out), jnp.float32, -bound, bound)
        return w, b

    k1, k2, k3, k4 = jax.random.split(key, 4)
    w1, b1 = linear(k1, input_shape, n_hidden)
    w2, b2 = linear(k2, n_hidden, n_hidden)
    wp, bp = linear(k3, n_hidden, n_actions)
    wv, bv = linear(k4, n_hidden, 1)
    return dict(w1=w1, b1=b1, w2=w2, b2=b2, wp=wp, bp=bp, wv=wv, bv=bv)


if __name__ == "__main__":
    # Shapes implied by the module: input_shape = 4 + 3*n_friends + 4*n_enemies.
    # 2 friends, 2 enemies -> input_shape = 18; n_hidden = 32; n_actions = 5.
    batch = 6
    input_shape = 18
    n_hidden = 32
    n_actions = 5

    key = jax.random.PRNGKey(0)
    kx, kp = jax.random.split(key)

    # x stands in for process(obs_list): a (B, input_shape) float tensor.
    x = jax.random.normal(kx, (batch, input_shape), dtype=jnp.float32)
    params = init_params(kp, input_shape, n_hidden, n_actions)
    packed = pack_params(params)

    # jit the wrapper so the post-kernel slices fuse with the output.
    fwd = jax.jit(lambda xx: iac_forward(xx, packed))
    value, logits = fwd(x)
    value = jax.block_until_ready(value)
    logits = jax.block_until_ready(logits)

    # Pure-JAX f32 reference against the original (unpacked) parameters.
    # Kernel matmuls use bf16 operands (f32 accumulation), so tolerances are
    # relaxed accordingly.
    h1 = jnp.maximum(x @ params["w1"] + params["b1"], 0.0)
    h2 = jnp.maximum(h1 @ params["w2"] + params["b2"], 0.0)
    ref_logits = h2 @ params["wp"] + params["bp"]
    ref_value = h2 @ params["wv"] + params["bv"]

    assert value.shape == (batch, 1)
    assert logits.shape == (batch, n_actions)
    assert jnp.allclose(value, ref_value, atol=2e-2, rtol=2e-2)
    assert jnp.allclose(logits, ref_logits, atol=2e-2, rtol=2e-2)

    print("KERNEL_OK")
</pallas_src>

<mosaic_0001>
module attributes {stable_mosaic.version = 11 : i64} {
  func.func @_iac_kernel(%arg0: i32, %arg1: memref<8x18xf32, #tpu.memory_space<vmem>>, %arg2: memref<18x128xbf16, #tpu.memory_space<vmem>>, %arg3: memref<128x256xbf16, #tpu.memory_space<vmem>>, %arg4: memref<1x384xf32, #tpu.memory_space<vmem>>, %arg5: memref<8x128xf32, #tpu.memory_space<vmem>>) attributes {dimension_semantics = [#tpu.dimension_semantics<parallel>], iteration_bounds = array<i64: 1>, scalar_prefetch = 0 : i64, scratch_operands = 0 : i64, tpu.core_type = #tpu.core_type<tc>, window_params = [{transform_indices = @transform_0, window_bounds = array<i64: 8, 18>}, {pipeline_mode = #tpu.pipeline_mode<synchronous>, transform_indices = @transform_1, window_bounds = array<i64: 18, 128>}, {pipeline_mode = #tpu.pipeline_mode<synchronous>, transform_indices = @transform_2, window_bounds = array<i64: 128, 256>}, {pipeline_mode = #tpu.pipeline_mode<synchronous>, transform_indices = @transform_3, window_bounds = array<i64: 1, 384>}, {transform_indices = @transform_4, window_bounds = array<i64: 8, 128>}]} {
    %c0 = arith.constant 0 : index
    %c0_0 = arith.constant 0 : index
    %0 = vector.load %arg1[%c0, %c0_0] : memref<8x18xf32, #tpu.memory_space<vmem>>, vector<8x18xf32>
    %1 = arith.truncf %0 : vector<8x18xf32> to vector<8x18xbf16>
    %c0_1 = arith.constant 0 : index
    %c0_2 = arith.constant 0 : index
    %2 = vector.load %arg2[%c0_1, %c0_2] : memref<18x128xbf16, #tpu.memory_space<vmem>>, vector<18x128xbf16>
    %cst = arith.constant dense<0.000000e+00> : vector<8x128xf32>
    %3 = tpu.matmul %1, %2, %cst {dimension_numbers = #tpu.dot_dimension_numbers<[1], [0], [0], [1], [0, 0, 1, 1], [], []>} : vector<8x18xbf16>, vector<18x128xbf16>, vector<8x128xf32> -> vector<8x128xf32>
    %c0_3 = arith.constant 0 : index
    %c0_4 = arith.constant 0 : index
    %4 = vector.load %arg4[%c0_3, %c0_4] : memref<1x384xf32, #tpu.memory_space<vmem>>, vector<1x128xf32>
    %5 = vector.broadcast %4 : vector<1x128xf32> to vector<8x128xf32>
    %6 = arith.addf %3, %5 : vector<8x128xf32>
    %cst_5 = arith.constant 0.000000e+00 : f32
    %7 = vector.broadcast %cst_5 : f32 to vector<8x128xf32>
    %8 = arith.maximumf %6, %7 : vector<8x128xf32>
    %9 = arith.truncf %8 : vector<8x128xf32> to vector<8x128xbf16>
    %c0_6 = arith.constant 0 : index
    %c0_7 = arith.constant 0 : index
    %10 = vector.load %arg3[%c0_6, %c0_7] : memref<128x256xbf16, #tpu.memory_space<vmem>>, vector<128x128xbf16>
    %cst_8 = arith.constant dense<0.000000e+00> : vector<8x128xf32>
    %11 = tpu.matmul %9, %10, %cst_8 {dimension_numbers = #tpu.dot_dimension_numbers<[1], [0], [0], [1], [0, 0, 1, 1], [], []>} : vector<8x128xbf16>, vector<128x128xbf16>, vector<8x128xf32> -> vector<8x128xf32>
    %c0_9 = arith.constant 0 : index
    %c128 = arith.constant 128 : index
    %12 = vector.load %arg4[%c0_9, %c128] : memref<1x384xf32, #tpu.memory_space<vmem>>, vector<1x128xf32>
    %13 = vector.broadcast %12 : vector<1x128xf32> to vector<8x128xf32>
    %14 = arith.addf %11, %13 : vector<8x128xf32>
    %cst_10 = arith.constant 0.000000e+00 : f32
    %15 = vector.broadcast %cst_10 : f32 to vector<8x128xf32>
    %16 = arith.maximumf %14, %15 : vector<8x128xf32>
    %17 = arith.truncf %16 : vector<8x128xf32> to vector<8x128xbf16>
    %c0_11 = arith.constant 0 : index
    %c128_12 = arith.constant 128 : index
    %18 = vector.load %arg3[%c0_11, %c128_12] : memref<128x256xbf16, #tpu.memory_space<vmem>>, vector<128x128xbf16>
    %cst_13 = arith.constant dense<0.000000e+00> : vector<8x128xf32>
    %19 = tpu.matmul %17, %18, %cst_13 {dimension_numbers = #tpu.dot_dimension_numbers<[1], [0], [0], [1], [0, 0, 1, 1], [], []>} : vector<8x128xbf16>, vector<128x128xbf16>, vector<8x128xf32> -> vector<8x128xf32>
    %c0_14 = arith.constant 0 : index
    %c256 = arith.constant 256 : index
    %20 = vector.load %arg4[%c0_14, %c256] : memref<1x384xf32, #tpu.memory_space<vmem>>, vector<1x128xf32>
    %21 = vector.broadcast %20 : vector<1x128xf32> to vector<8x128xf32>
    %22 = arith.addf %19, %21 : vector<8x128xf32>
    %c0_15 = arith.constant 0 : index
    %c0_16 = arith.constant 0 : index
    %23 = vector.load %arg5[%c0_15, %c0_16] : memref<8x128xf32, #tpu.memory_space<vmem>>, vector<8x128xf32>
    tpu.vector_store %arg5[%c0_15, %c0_16], %22 {strides = array<i32>} : memref<8x128xf32, #tpu.memory_space<vmem>>, vector<8x128xf32>,
    return
  }
  func.func @transform_0(%arg0: i32) -> (i32, i32) {
    %c0_i32 = arith.constant 0 : i32
    %c0_i32_0 = arith.constant 0 : i32
    return %arg0, %c0_i32 : i32, i32
  }
  func.func @transform_1(%arg0: i32) -> (i32, i32) {
    %c0_i32 = arith.constant 0 : i32
    %c0_i32_0 = arith.constant 0 : i32
    %c0_i32_1 = arith.constant 0 : i32
    return %c0_i32, %c0_i32_0 : i32, i32
  }
  func.func @transform_2(%arg0: i32) -> (i32, i32) {
    %c0_i32 = arith.constant 0 : i32
    %c0_i32_0 = arith.constant 0 : i32
    %c0_i32_1 = arith.constant 0 : i32
    return %c0_i32, %c0_i32_0 : i32, i32
  }
  func.func @transform_3(%arg0: i32) -> (i32, i32) {
    %c0_i32 = arith.constant 0 : i32
    %c0_i32_0 = arith.constant 0 : i32
    %c0_i32_1 = arith.constant 0 : i32
    return %c0_i32, %c0_i32_0 : i32, i32
  }
  func.func @transform_4(%arg0: i32) -> (i32, i32) {
    %c0_i32 = arith.constant 0 : i32
    %c0_i32_0 = arith.constant 0 : i32
    return %arg0, %c0_i32 : i32, i32
  }
}

</mosaic_0001>

<bundles_post_ra>
// kernel: _lambda_.1
= control target key start
LH: loop header
LB: loop body
LE: loop exit
PB: predicated region body
PF: predicated region fallthrough
CT: control target
= control target key end

     0   :  { %9 = vsyncpa [#allocation3], 0  ;;  %s620_s0 = inlined_call_operand.hbm [shape: f32[6,18], index: 0, kind: input, shape index: {}]   ;;  %s621_s1 = inlined_call_operand.hbm [shape: bf16[18,128], index: 1, kind: input, shape index: {}]   ;;  %s622_s2 = inlined_call_operand.hbm [shape: bf16[128,256], index: 2, kind: input, shape index: {}]   ;;  %s623_s3 = inlined_call_operand.vmem [shape: f32[1,384], index: 3, kind: input, shape index: {}]   ;;  %s624_s4 = inlined_call_operand.vmem [shape: f32[6,128], index: 4, kind: output, shape index: {}]  }
   0x1   :  { %10 = vsyncpa [#allocation5], 0  ;;  %s541_s15 = smov [#allocation4]  }
   0x2   :  { %s26_s16 = sshll.u32 %s541_s15, 4  ;;  %s27_s16 = int_to_ptr.vmem [resolvable:$true] %s26_s16 }
   0x3   :  { %s485_s17 = scalar_lea.vmem %s27_s16, 192  ;;  %p490_p1 = scmp.lt.s32.totalorder %s27_s16, %s27_s16 }
   0x4   :  { %p486_p0 = scmp.ne.s32.totalorder %s27_s16, %s485_s17  ;;  %p491_p2 = scmp.lt.s32.totalorder %s485_s17, %s485_s17 }
   0x6   :  { %p492_p3 = por %p491_p2, %p490_p1 }
   0x8   :  { %p493_p4 = pnand %p492_p3, %p486_p0 }
   0xa   :  { %496 = shalt.err (!%p493_p4)
}
   0xb   :  { %s542_s18 = smov 64   ;;  %s543_s19 = smov 4  }
   0xc   :  { %32 = dma.hbm_to_vmem [thread:$0]  %s621_s1, 192, %s27_s16, [#allocation5], %s542_s18, %s542_s18, %s543_s19  }
   0xd   :  { %s544_s22 = smov [#allocation2]   ;;  %s545_s24 = smov [#allocation6]  }
   0xe   :  { %s17_s23 = sshll.u32 %s544_s22, 4  ;;  %s38_s25 = sshll.u32 %s545_s24, 4  ;;  %s18_s23 = int_to_ptr.vmem [resolvable:$true] %s17_s23  ;;  %s39_s25 = int_to_ptr.vmem [resolvable:$true] %s38_s25 }
   0xf   :  { %s505_s26 = scalar_lea.vmem %s18_s23, 128  ;;  %p510_p6 = scmp.lt.s32.totalorder %s18_s23, %s18_s23 }
  0x10   :  { %p506_p5 = scmp.ne.s32.totalorder %s18_s23, %s505_s26  ;;  %p511_p7 = scmp.lt.s32.totalorder %s505_s26, %s505_s26 }
  0x12   :  { %p512_p8 = por %p511_p7, %p510_p6 }
  0x14   :  { %p513_p9 = pnand %p512_p8, %p506_p5 }
  0x16   :  { %516 = shalt.err (!%p513_p9)
}
  0x17   :  { %20 = dma.hbm_to_vmem [thread:$0]  %s620_s0, 128, %s18_s23, [#allocation3]  }
  0x18   :  { %s525_s29 = scalar_lea.vmem %s39_s25, 2048  ;;  %p530_p11 = scmp.lt.s32.totalorder %s39_s25, %s39_s25 }
  0x19   :  { %p526_p10 = scmp.ne.s32.totalorder %s39_s25, %s525_s29  ;;  %p531_p12 = scmp.lt.s32.totalorder %s525_s29, %s525_s29 }
  0x1b   :  { %p532_p13 = por %p531_p12, %p530_p11 }
  0x1d   :  { %p533_p0 = pnand %p532_p13, %p526_p10 }
  0x1f   :  { %536 = shalt.err (!%p533_p0)
}
  0x20   :  { %s546_s1 = smov 128   ;;  %s547_s30 = smov 8  }
  0x21   :  { %44 = dma.hbm_to_vmem [thread:$0]  %s622_s2, 2048, %s39_s25, [#allocation5], %s546_s1, %s546_s1, %s547_s30  }
  0x22   :  { %537 = dma.done.wait [#allocation3], 128  }
  0x23   :  { %538 = vsyncadd [#allocation3], 4294967168 }
  0x24   :  { %539 = dma.done.wait [#allocation5], 2240  }
  0x25   :  { %540 = vsyncadd [#allocation5], 4294965056  ;;  %v548_v0 = vmov 0.0   ;;  %vm549_vm0 = vmmov 0   ;;  %vm82_vm1 = vcmask 1040384   ;;  %v460_v2 = vld [vmem:[#allocation4] sm:$0xff]  }
  0x26   :  { %402 = vmatprep.subr.bf16.mxu0 %v548_v0  ;;  %406 = vmatprep.mubr.msk.bf16.mxu0 %vm549_vm0, %v548_v0  ;;  %v459_v1 = vld [vmem:[#allocation4 + $0x8] ss:$0 sps:$4 sm:$0x11]   ;;  %v57_v4 = vld [vmem:[#allocation2] sm:$0xff]  ;;  %v462_v6 = vld [vmem:[#allocation6 + $0x60] ss:$8 sps:$4 sm:$0xff]  }
  0x27   :  { %410 = vmatprep.subr.bf16.mxu1 %v548_v0  ;;  %426 = vmatprep.mubr.msk.bf16.mxu1 %vm549_vm0, %v548_v0  ;;  %v84_v3 = vsel %vm82_vm1, %v459_v1, 0  ;;  %v461_v5 = vld [vmem:[#allocation6 + $0x70] ss:$8 sps:$4 sm:$0xff]   ;;  %v58_v7 = vpack.c.bf16 %v57_v4, %v57_v4  ;;  %vm78_vm2 = vcmask 146432   ;;  %v464_v9 = vld [vmem:[#allocation6 + $0x40] ss:$8 sps:$4 sm:$0xff]  }
  0x28   :  { %403 = vmatpush3.bf16.msra.mxu0 %v84_v3  ;;  %411 = vmatpush3.bf16.msra.mxu1 %v461_v5  ;;  %v463_v8 = vld [vmem:[#allocation6 + $0x50] ss:$8 sps:$4 sm:$0xff]   ;;  %v466_v11 = vld [vmem:[#allocation6 + $0x20] ss:$8 sps:$4 sm:$0xff]   ;;  %v469_v14 = vld [vmem:[#allocation6 + $0x74] ss:$8 sps:$4 sm:$0xff]  }
  0x29   :  { %404 = vmatprep.subr.bf16.mxu0 %v548_v0  ;;  %412 = vmatprep.subr.bf16.mxu1 %v548_v0  ;;  %v465_v10 = vld [vmem:[#allocation6 + $0x30] ss:$8 sps:$4 sm:$0xff]   ;;  %v468_v13 = vld [vmem:[#allocation6] ss:$8 sps:$4 sm:$0xff]   ;;  %v470_v15 = vld [vmem:[#allocation6 + $0x64] ss:$8 sps:$4 sm:$0xff]  }
  0x2a   :  { %v467_v12 = vld [vmem:[#allocation6 + $0x10] ss:$8 sps:$4 sm:$0xff]   ;;  %v471_v16 = vld [vmem:[#allocation6 + $0x54] ss:$8 sps:$4 sm:$0xff]   ;;  %v472_v17 = vld [vmem:[#allocation6 + $0x44] ss:$8 sps:$4 sm:$0xff]  }
  0x2b   :  { %v473_v18 = vld [vmem:[#allocation6 + $0x34] ss:$8 sps:$4 sm:$0xff]   ;;  %v474_v19 = vld [vmem:[#allocation6 + $0x24] ss:$8 sps:$4 sm:$0xff]  }
  0x2c   :  { %405 = vmatpush3.bf16.msra.mxu0 %v460_v2  ;;  %413 = vmatpush3.bf16.msra.mxu1 %v462_v6  ;;  %v359_v20 = vld [vmem:[%s623_s3] ss:$0 sm:$0xff]  ;;  %v475_v28 = vld [vmem:[#allocation6 + $0x14] ss:$8 sps:$4 sm:$0xff]   ;;  %v363_v30 = vld [vmem:[%s623_s3 + $0x1] ss:$0 sm:$0xff] }
  0x2d   :  { %430 = vmatprep.subr.bf16.mxu0 %v548_v0  ;;  %414 = vmatprep.subr.bf16.mxu1 %v548_v0  ;;  %v476_v29 = vld [vmem:[#allocation6 + $0x4] ss:$8 sps:$4 sm:$0xff]  }
  0x2e   :  { %v372_v38 = vld [vmem:[%s623_s3 + $0x2] ss:$0 sm:$0xff] }
  0x2f   :  { %407 = vmatmul.mubr.msk.bf16.vlgmr.msra.gmra.mxu0 %vm78_vm2, %v58_v7 }
  0x30   :  { %446 = vmatprep.mubr.msk.bf16.mxu0 %vm549_vm0, %v548_v0  ;;  %415 = vmatpush3.bf16.msra.mxu1 %v463_v8 }
  0x31   :  { %416 = vmatprep.subr.bf16.mxu1 %v548_v0  ;;  %431 = vmatpush3.bf16.msra.mxu0 %v469_v14 }
  0x32   :  { %432 = vmatprep.subr.bf16.mxu0 %v548_v0 }
  0x34   :  { %417 = vmatpush3.bf16.msra.mxu1 %v464_v9 }
  0x35   :  { %418 = vmatprep.subr.bf16.mxu1 %v548_v0  ;;  %433 = vmatpush3.bf16.msra.mxu0 %v470_v15 }
  0x36   :  { %434 = vmatprep.subr.bf16.mxu0 %v548_v0 }
  0x38   :  { %419 = vmatpush3.bf16.msra.mxu1 %v465_v10 }
  0x39   :  { %420 = vmatprep.subr.bf16.mxu1 %v548_v0  ;;  %435 = vmatpush3.bf16.msra.mxu0 %v471_v16 }
  0x3a   :  { %436 = vmatprep.subr.bf16.mxu0 %v548_v0 }
  0x3c   :  { %421 = vmatpush3.bf16.msra.mxu1 %v466_v11 }
  0x3d   :  { %422 = vmatprep.subr.bf16.mxu1 %v548_v0  ;;  %437 = vmatpush3.bf16.msra.mxu0 %v472_v17 }
  0x3e   :  { %438 = vmatprep.subr.bf16.mxu0 %v548_v0 }
  0x40   :  { %423 = vmatpush3.bf16.msra.mxu1 %v467_v12 }
  0x41   :  { %424 = vmatprep.subr.bf16.mxu1 %v548_v0  ;;  %439 = vmatpush3.bf16.msra.mxu0 %v473_v18 }
  0x42   :  { %440 = vmatprep.subr.bf16.mxu0 %v548_v0 }
  0x44   :  { %425 = vmatpush3.bf16.msra.mxu1 %v468_v13 }
  0x45   :  { %441 = vmatpush3.bf16.msra.mxu0 %v474_v19 }
  0x46   :  { %442 = vmatprep.subr.bf16.mxu0 %v548_v0 }
  0x49   :  { %443 = vmatpush3.bf16.msra.mxu0 %v475_v28 }
  0x4a   :  { %444 = vmatprep.subr.bf16.mxu0 %v548_v0 }
  0x4d   :  { %445 = vmatpush3.bf16.msra.mxu0 %v476_v29 }
  0xef   :  { %v120_v21 = vpop.f32.mrf.mxu0 }
  0xf0   :  { %v121_v22 = vadd.f32 %v359_v20, %v120_v21 }
  0xf1   :  { %v408_v23 = vpop.f32.mrf.mxu0 }
  0xf2   :  { %v126_v24 = vmax.f32 %v121_v22, 0.0 }
  0xf3   :  { %v123_v25 = vpop.f32.mrf.mxu0 }
  0xf4   :  { %v127_v26 = vpack.c.bf16 %v126_v24, %v126_v24 }
  0xf5   :  { %v409_v27 = vpop.f32.mrf.mxu0 }
  0xf6   :  { %427 = vmatmul.mubr.bf16.vlgmr.msra.gmra.mxu1 %v127_v26 }
 0x1b6   :  { %v233_v31 = vpop.f32.mrf.mxu1 }
 0x1b7   :  { %v234_v32 = vadd.f32 %v363_v30, %v233_v31 }
 0x1b8   :  { %v428_v33 = vpop.f32.mrf.mxu1 }
 0x1b9   :  { %v239_v34 = vmax.f32 %v234_v32, 0.0 }
 0x1ba   :  { %v236_v35 = vpop.f32.mrf.mxu1 }
 0x1bb   :  { %v240_v36 = vpack.c.bf16 %v239_v34, %v239_v34 }
 0x1bc   :  { %v429_v37 = vpop.f32.mrf.mxu1 }
 0x1bd   :  { %447 = vmatmul.mubr.bf16.vlgmr.msra.gmra.mxu0 %v240_v36 }
 0x27d   :  { %v346_v39 = vpop.f32.mrf.mxu0 }
 0x27e   :  { %v347_v40 = vadd.f32 %v372_v38, %v346_v39 }
 0x27f   :  { %v448_v41 = vpop.f32.mrf.mxu0 }
 0x280   :  { %352 = vst [vmem:[%s624_s4] sm:$0xff] %v347_v40 }
 0x281   :  { %v349_v42 = vpop.f32.mrf.mxu0 }
 0x283   :  { %v449_v43 = vpop.f32.mrf.mxu0 }
 0x284   :  { %357 = vsyncpa [#allocation3], 1 }
 0x285   :  { %358 = vsyncpa [#allocation5], 1 }

</bundles_post_ra>
